<compile_context>
chip_gen: v6e
topology: v6e:2x2x1
jax: 0.10.0
libtpu: 0.0.40
codegen_flags: <defaults>
</compile_context>

<pallas_src>
import jax
import jax.numpy as jnp
from jax import lax
from jax.experimental import pallas as pl
from jax.experimental.pallas import tpu as pltpu

EPS = 1e-6            # matches GIoULoss(eps=1e-6)
LANES = 128
CHUNK_ROWS = 16       # rows per inner-loop chunk (two (8,128) sublane tiles)
MAX_BLOCK_ROWS = 1024 # rows of 128 boxes per grid step
VAR_XY = 0.1          # SSD decode variances
VAR_WH = 0.2


def _round_up(x, m):
    return ((x + m - 1) // m) * m


def _cdiv(a, b):
    return -(-a // b)


# ---------------------------------------------------------------------------
# Pallas kernel
# ---------------------------------------------------------------------------
def _make_giou_kernel(br, inner_tiles, n, with_weight, with_anchor, mask_mode):
    """Builds the per-tile GIoU loss kernel.

    Inputs (coordinate planes, float32):
      anchor path : delta[4,br,128], anchor_xywh[4,br,128], target[4,br,128]
      plain path  : pred_xyxy[4,br,128], target[4,br,128]
      optional    : weight[br,128]
    Output: out_ref[1,8,128] per-split partial sum, accumulated over the
    "arbitrary" inner grid axis.

    mask_mode: 'none' | 'always' | 'dynamic' (runtime per-tile scalar check).
    """
    n_chunks = br // CHUNK_ROWS

    def kernel(*refs):
        if with_anchor:
            d_ref, a_ref, t_ref = refs[0], refs[1], refs[2]
            rest = refs[3:]
        else:
            p_ref, t_ref = refs[0], refs[1]
            rest = refs[2:]
        if with_weight:
            w_ref, out_ref = rest
        else:
            (out_ref,) = rest

        s = pl.program_id(0)
        t = pl.program_id(1)

        @pl.when(t == 0)
        def _init():
            out_ref[...] = jnp.zeros_like(out_ref)

        if mask_mode != "none":
            # Valid boxes remaining at this tile (scalar-unit arithmetic).
            tile_start = (s * inner_tiles + t) * (br * LANES)
            local_n = n - tile_start
            # Per-tile iota, hoisted out of the chunk loop (built once).
            row = lax.broadcasted_iota(jnp.int32, (CHUNK_ROWS, LANES), 0)
            lane = lax.broadcasted_iota(jnp.int32, (CHUNK_ROWS, LANES), 1)
            base_idx = row * LANES + lane

        def tile_sum(masked):
            def chunk(ci, acc):
                r0 = pl.multiple_of(ci * CHUNK_ROWS, CHUNK_ROWS)
                sl = pl.ds(r0, CHUNK_ROWS)

                if with_anchor:
                    # SSD decode fused in-kernel (exp -> EUP slot, rest VALU).
                    dx = d_ref[0, sl, :]
                    dy = d_ref[1, sl, :]
                    dw = d_ref[2, sl, :]
                    dh = d_ref[3, sl, :]
                    acx = a_ref[0, sl, :]
                    acy = a_ref[1, sl, :]
                    aw = a_ref[2, sl, :]
                    ah = a_ref[3, sl, :]
                    pcx = acx + dx * VAR_XY * aw
                    pcy = acy + dy * VAR_XY * ah
                    pw = aw * jnp.exp(dw * VAR_WH)
                    ph = ah * jnp.exp(dh * VAR_WH)
                    px1 = pcx - 0.5 * pw
                    py1 = pcy - 0.5 * ph
                    px2 = px1 + pw
                    py2 = py1 + ph
                else:
                    px1 = p_ref[0, sl, :]
                    py1 = p_ref[1, sl, :]
                    px2 = p_ref[2, sl, :]
                    py2 = p_ref[3, sl, :]
                tx1 = t_ref[0, sl, :]
                ty1 = t_ref[1, sl, :]
                tx2 = t_ref[2, sl, :]
                ty2 = t_ref[3, sl, :]

                # Intersection / union.
                inter_w = jnp.minimum(px2, tx2) - jnp.maximum(px1, tx1)
                inter_h = jnp.minimum(py2, ty2) - jnp.maximum(py1, ty1)
                inter = jnp.maximum(inter_w, 0.0) * jnp.maximum(inter_h, 0.0)
                union = ((px2 - px1) * (py2 - py1)
                         + (tx2 - tx1) * (ty2 - ty1) - inter + EPS)
                iou = inter * pl.reciprocal(union, approx=True)

                # Smallest enclosing box:
                #   iou - (c_area - union)/c_area == iou + union/c_area - 1
                cw = jnp.maximum(px2, tx2) - jnp.minimum(px1, tx1)
                ch = jnp.maximum(py2, ty2) - jnp.minimum(py1, ty1)
                c_area = cw * ch + EPS
                giou = iou + union * pl.reciprocal(c_area, approx=True) - 1.0

                loss = -jnp.log(jnp.maximum(giou, EPS))

                if masked:
                    # Only boxes with in-tile index < (n - tile_start) count.
                    thresh = local_n - r0 * LANES
                    loss = jnp.where(base_idx < thresh, loss, 0.0)
                if with_weight:
                    loss = loss * w_ref[sl, :]

                # Fold the (CHUNK_ROWS, 128) chunk into the (8, 128) carry.
                folded = loss[0:8, :]
                for k in range(1, CHUNK_ROWS // 8):
                    folded = folded + loss[8 * k:8 * (k + 1), :]
                return acc + folded

            return lax.fori_loop(0, n_chunks, chunk,
                                 jnp.zeros((8, LANES), jnp.float32))

        if mask_mode == "none":
            out_ref[0] += tile_sum(False)
        elif mask_mode == "always":
            out_ref[0] += tile_sum(True)
        else:  # "dynamic": only the tail tile(s) pay for the mask.
            needs_mask = local_n < br * LANES

            @pl.when(needs_mask)
            def _masked():
                out_ref[0] += tile_sum(True)

            @pl.when(jnp.logical_not(needs_mask))
            def _unmasked():
                out_ref[0] += tile_sum(False)

    return kernel


# ---------------------------------------------------------------------------
# Plain-JAX glue (anchor xyxy->xywh fuses into the repack); hot path is Pallas.
# ---------------------------------------------------------------------------
def xyxy_2_xywh(boxes):
    cx = (boxes[:, 0] + boxes[:, 2]) * 0.5
    cy = (boxes[:, 1] + boxes[:, 3]) * 0.5
    w = boxes[:, 2] - boxes[:, 0]
    h = boxes[:, 3] - boxes[:, 1]
    return jnp.stack([cx, cy, w, h], axis=1)


def giou_loss(pred, target, anchor=None, weight=None, avg_factor=None,
              reduction="mean", loss_weight=1.0):
    assert pred.shape[0] == target.shape[0]
    n = int(pred.shape[0])

    pred = jnp.asarray(pred, jnp.float32)
    target = jnp.asarray(target, jnp.float32)
    with_anchor = anchor is not None
    with_weight = weight is not None

    # --- tile geometry ------------------------------------------------------
    rows_needed = max(1, _cdiv(n, LANES))
    # Leading "parallel" grid axis: two slices feed both v7x TensorCores when
    # there is enough work; on single-TC v5e/v6e it is just one extra cheap
    # sequential grid step.
    n_split = 2 if rows_needed >= 64 else 1
    per_split = _cdiv(rows_needed, n_split)
    inner_tiles = _cdiv(per_split, MAX_BLOCK_ROWS)
    br = _round_up(_cdiv(per_split, inner_tiles), CHUNK_ROWS)
    t_rows = n_split * inner_tiles * br
    npad = t_rows * LANES
    any_padding = npad != n
    total_tiles = n_split * inner_tiles

    # --- repack into lane-dense coordinate planes ---------------------------
    # TODO(synk): this pad+transpose is still one extra HBM read+write per
    # tensor; producing planar [4, N] boxes upstream (or fusing the repack into
    # the pallas_call operands via allow_input_fusion) would remove it.
    def to_planes(x):
        x = jnp.pad(x, ((0, npad - n), (0, 0)))          # [npad, 4]
        return jnp.transpose(x).reshape(4, t_rows, LANES)  # [4, T, 128]

    plane_spec = pl.BlockSpec((4, br, LANES),
                              lambda s, t: (0, s * inner_tiles + t, 0))

    if with_anchor:
        anchor_xywh = xyxy_2_xywh(jnp.asarray(anchor, jnp.float32))
        args = [to_planes(pred), to_planes(anchor_xywh), to_planes(target)]
        in_specs = [plane_spec, plane_spec, plane_spec]
    else:
        args = [to_planes(pred), to_planes(target)]
        in_specs = [plane_spec, plane_spec]

    if with_weight:
        w = jnp.asarray(weight, jnp.float32).reshape(n)
        args.append(jnp.pad(w, (0, npad - n)).reshape(t_rows, LANES))
        in_specs.append(pl.BlockSpec((br, LANES),
                                     lambda s, t: (s * inner_tiles + t, 0)))
        mask_mode = "none"      # padded weights are 0; padded loss is finite.
    elif not any_padding:
        mask_mode = "none"
    elif total_tiles == 1:
        mask_mode = "always"
    else:
        mask_mode = "dynamic"

    partials = pl.pallas_call(
        _make_giou_kernel(br, inner_tiles, n, with_weight, with_anchor,
                          mask_mode),
        out_shape=jax.ShapeDtypeStruct((n_split, 8, LANES), jnp.float32),
        grid=(n_split, inner_tiles),
        in_specs=in_specs,
        out_specs=pl.BlockSpec((1, 8, LANES), lambda s, t: (s, 0, 0)),
        compiler_params=pltpu.CompilerParams(
            dimension_semantics=("parallel", "arbitrary"),
            vmem_limit_bytes=32 * 1024 * 1024),
    )(*args)

    total = jnp.sum(partials)

    # weight_reduce_loss semantics.
    if reduction == "mean":
        denom = jnp.float32(n) if avg_factor is None else jnp.float32(avg_factor)
        loss = total / denom
    elif reduction == "sum":
        loss = total
    else:
        # TODO(synk): reduction='none' needs the per-box loss vector as output.
        raise NotImplementedError("reduction must be 'mean' or 'sum'")
    return loss_weight * loss


# ---------------------------------------------------------------------------
# Pure-JAX references (sanity checks in __main__ only).
# ---------------------------------------------------------------------------
def _decode_ref(deltas, anchor_xyxy):
    a = xyxy_2_xywh(anchor_xyxy)
    variances = jnp.array([[VAR_XY, VAR_XY, VAR_WH, VAR_WH]], jnp.float32)
    cxcy = a[:, :2] + deltas[:, :2] * variances[:, :2] * a[:, 2:]
    wh = a[:, 2:] * jnp.exp(deltas[:, 2:] * variances[:, 2:])
    x1y1 = cxcy - wh * 0.5
    x2y2 = x1y1 + wh
    return jnp.concatenate([x1y1, x2y2], axis=1)


def _giou_loss_ref(pred, target, weight=None, reduction="mean"):
    px1, py1, px2, py2 = (pred[:, i] for i in range(4))
    tx1, ty1, tx2, ty2 = (target[:, i] for i in range(4))
    inter = (jnp.maximum(jnp.minimum(px2, tx2) - jnp.maximum(px1, tx1), 0.0)
             * jnp.maximum(jnp.minimum(py2, ty2) - jnp.maximum(py1, ty1), 0.0))
    union = (px2 - px1) * (py2 - py1) + (tx2 - tx1) * (ty2 - ty1) - inter + EPS
    iou = inter / union
    c_area = ((jnp.maximum(px2, tx2) - jnp.minimum(px1, tx1))
              * (jnp.maximum(py2, ty2) - jnp.minimum(py1, ty1)) + EPS)
    giou = iou - (c_area - union) / c_area
    loss = -jnp.log(jnp.maximum(giou, EPS))
    if weight is not None:
        loss = loss * weight
    return loss.mean() if reduction == "mean" else loss.sum()


if __name__ == "__main__":
    key = jax.random.PRNGKey(0)
    k1, k2, k3, k4, k5, k6 = jax.random.split(key, 6)

    N = 64  # N_max boxes, each [x1, y1, x2, y2]

    # Deterministic, well-formed target boxes.
    t_xy = jax.random.uniform(k1, (N, 2), minval=0.0, maxval=10.0)
    t_wh = jax.random.uniform(k2, (N, 2), minval=1.0, maxval=5.0)
    target = jnp.concatenate([t_xy, t_xy + t_wh], axis=1)

    # Predicted boxes near the targets (anchor=None path -> pred is xyxy).
    p_xy = t_xy + jax.random.uniform(k3, (N, 2), minval=-1.0, maxval=1.0)
    p_wh = t_wh + jax.random.uniform(k4, (N, 2), minval=-0.5, maxval=0.5)
    pred = jnp.concatenate([p_xy, p_xy + p_wh], axis=1)

    # 1) weight=None, reduction='mean' (single-tile masked path).
    loss = giou_loss(pred, target)
    jax.block_until_ready(loss)
    assert loss.shape == () and bool(jnp.isfinite(loss))
    ref = _giou_loss_ref(pred, target)
    assert jnp.allclose(loss, ref, rtol=5e-2, atol=5e-2), (loss, ref)

    # 2) weighted 'sum' path (no in-kernel mask; padded weights are zero).
    w = jax.random.uniform(k5, (N,), minval=0.0, maxval=1.0)
    loss_w = giou_loss(pred, target, weight=w, reduction="sum")
    jax.block_until_ready(loss_w)
    ref_w = _giou_loss_ref(pred, target, weight=w, reduction="sum")
    assert jnp.allclose(loss_w, ref_w, rtol=5e-2, atol=5e-2), (loss_w, ref_w)

    # 3) anchor path: SSD decode fused into the kernel.
    deltas = jax.random.uniform(k6, (N, 4), minval=-0.2, maxval=0.2)
    anchor = target  # anchors near targets -> well-conditioned giou
    loss_a = giou_loss(deltas, target, anchor=anchor)
    jax.block_until_ready(loss_a)
    ref_a = _giou_loss_ref(_decode_ref(deltas, anchor), target)
    assert jnp.allclose(loss_a, ref_a, rtol=5e-2, atol=5e-2), (loss_a, ref_a)

    print("KERNEL_OK")
</pallas_src>

<mosaic_0001>
module attributes {stable_mosaic.version = 11 : i64} {
  func.func @kernel(%arg0: i32, %arg1: i32, %arg2: memref<4x16x128xf32, #tpu.memory_space<vmem>>, %arg3: memref<4x16x128xf32, #tpu.memory_space<vmem>>, %arg4: memref<1x8x128xf32, #tpu.memory_space<vmem>>) attributes {dimension_semantics = [#tpu.dimension_semantics<parallel>, #tpu.dimension_semantics<arbitrary>], iteration_bounds = array<i64: 1, 1>, scalar_prefetch = 0 : i64, scratch_operands = 0 : i64, tpu.core_type = #tpu.core_type<tc>, window_params = [{transform_indices = @transform_0, window_bounds = array<i64: 4, 16, 128>}, {transform_indices = @transform_1, window_bounds = array<i64: 4, 16, 128>}, {transform_indices = @transform_2, window_bounds = array<i64: 1, 8, 128>}]} {
    %c0_i32 = arith.constant 0 : i32
    %0 = arith.cmpi eq, %arg1, %c0_i32 : i32
    %1 = arith.extui %0 : i1 to i32
    %c0_i32_0 = arith.constant 0 : i32
    %2 = arith.cmpi ne, %1, %c0_i32_0 : i32
    scf.if %2 {
      %cst_30 = arith.constant 0.000000e+00 : f32
      %97 = vector.broadcast %cst_30 : f32 to vector<1x8x128xf32>
      %c0_31 = arith.constant 0 : index
      %c0_32 = arith.constant 0 : index
      %c0_33 = arith.constant 0 : index
      %98 = vector.load %arg4[%c0_31, %c0_32, %c0_33] : memref<1x8x128xf32, #tpu.memory_space<vmem>>, vector<1x8x128xf32>
      tpu.vector_store %arg4[%c0_31, %c0_32, %c0_33], %97 {strides = array<i32>} : memref<1x8x128xf32, #tpu.memory_space<vmem>>, vector<1x8x128xf32>,
    } else {
    }
    %c1_i32 = arith.constant 1 : i32
    %3 = arith.muli %arg0, %c1_i32 : i32
    %4 = arith.addi %3, %arg1 : i32
    %c2048_i32 = arith.constant 2048 : i32
    %5 = arith.muli %4, %c2048_i32 : i32
    %c64_i32 = arith.constant 64 : i32
    %6 = arith.subi %c64_i32, %5 : i32
    %7 = tpu.iota {dimensions = array<i32: 0>} : vector<16x128xi32>
    %8 = tpu.iota {dimensions = array<i32: 1>} : vector<16x128xi32>
    %c128_i32 = arith.constant 128 : i32
    %9 = vector.broadcast %c128_i32 : i32 to vector<16x128xi32>
    %10 = arith.muli %7, %9 : vector<16x128xi32>
    %11 = arith.addi %10, %8 : vector<16x128xi32>
    %c0 = arith.constant 0 : index
    %c0_1 = arith.constant 0 : index
    %c0_2 = arith.constant 0 : index
    %12 = vector.load %arg4[%c0, %c0_1, %c0_2] : memref<1x8x128xf32, #tpu.memory_space<vmem>>, vector<1x8x128xf32>
    %13 = vector.shape_cast %12 : vector<1x8x128xf32> to vector<8x128xf32>
    %cst = arith.constant 0.000000e+00 : f32
    %14 = vector.broadcast %cst : f32 to vector<8x128xf32>
    %c0_i32_3 = arith.constant 0 : i32
    %c16_i32 = arith.constant 16 : i32
    %15 = arith.muli %c0_i32_3, %c16_i32 : i32
    %16 = tpu.assume_multiple %15, 16 : i32
    %c0_4 = arith.constant 0 : index
    %17 = arith.index_cast %16 : i32 to index
    %c0_5 = arith.constant 0 : index
    %18 = vector.load %arg2[%c0_4, %17, %c0_5] : memref<4x16x128xf32, #tpu.memory_space<vmem>>, vector<1x16x128xf32>
    %19 = vector.shape_cast %18 : vector<1x16x128xf32> to vector<16x128xf32>
    %c1 = arith.constant 1 : index
    %20 = arith.index_cast %16 : i32 to index
    %c0_6 = arith.constant 0 : index
    %21 = vector.load %arg2[%c1, %20, %c0_6] : memref<4x16x128xf32, #tpu.memory_space<vmem>>, vector<1x16x128xf32>
    %22 = vector.shape_cast %21 : vector<1x16x128xf32> to vector<16x128xf32>
    %c2 = arith.constant 2 : index
    %23 = arith.index_cast %16 : i32 to index
    %c0_7 = arith.constant 0 : index
    %24 = vector.load %arg2[%c2, %23, %c0_7] : memref<4x16x128xf32, #tpu.memory_space<vmem>>, vector<1x16x128xf32>
    %25 = vector.shape_cast %24 : vector<1x16x128xf32> to vector<16x128xf32>
    %c3 = arith.constant 3 : index
    %26 = arith.index_cast %16 : i32 to index
    %c0_8 = arith.constant 0 : index
    %27 = vector.load %arg2[%c3, %26, %c0_8] : memref<4x16x128xf32, #tpu.memory_space<vmem>>, vector<1x16x128xf32>
    %28 = vector.shape_cast %27 : vector<1x16x128xf32> to vector<16x128xf32>
    %c0_9 = arith.constant 0 : index
    %29 = arith.index_cast %16 : i32 to index
    %c0_10 = arith.constant 0 : index
    %30 = vector.load %arg3[%c0_9, %29, %c0_10] : memref<4x16x128xf32, #tpu.memory_space<vmem>>, vector<1x16x128xf32>
    %31 = vector.shape_cast %30 : vector<1x16x128xf32> to vector<16x128xf32>
    %c1_11 = arith.constant 1 : index
    %32 = arith.index_cast %16 : i32 to index
    %c0_12 = arith.constant 0 : index
    %33 = vector.load %arg3[%c1_11, %32, %c0_12] : memref<4x16x128xf32, #tpu.memory_space<vmem>>, vector<1x16x128xf32>
    %34 = vector.shape_cast %33 : vector<1x16x128xf32> to vector<16x128xf32>
    %c2_13 = arith.constant 2 : index
    %35 = arith.index_cast %16 : i32 to index
    %c0_14 = arith.constant 0 : index
    %36 = vector.load %arg3[%c2_13, %35, %c0_14] : memref<4x16x128xf32, #tpu.memory_space<vmem>>, vector<1x16x128xf32>
    %37 = vector.shape_cast %36 : vector<1x16x128xf32> to vector<16x128xf32>
    %c3_15 = arith.constant 3 : index
    %38 = arith.index_cast %16 : i32 to index
    %c0_16 = arith.constant 0 : index
    %39 = vector.load %arg3[%c3_15, %38, %c0_16] : memref<4x16x128xf32, #tpu.memory_space<vmem>>, vector<1x16x128xf32>
    %40 = vector.shape_cast %39 : vector<1x16x128xf32> to vector<16x128xf32>
    %41 = arith.minimumf %25, %37 : vector<16x128xf32>
    %42 = arith.maximumf %19, %31 : vector<16x128xf32>
    %43 = arith.subf %41, %42 : vector<16x128xf32>
    %44 = arith.minimumf %28, %40 : vector<16x128xf32>
    %45 = arith.maximumf %22, %34 : vector<16x128xf32>
    %46 = arith.subf %44, %45 : vector<16x128xf32>
    %cst_17 = arith.constant 0.000000e+00 : f32
    %47 = vector.broadcast %cst_17 : f32 to vector<16x128xf32>
    %48 = arith.maximumf %43, %47 : vector<16x128xf32>
    %cst_18 = arith.constant 0.000000e+00 : f32
    %49 = vector.broadcast %cst_18 : f32 to vector<16x128xf32>
    %50 = arith.maximumf %46, %49 : vector<16x128xf32>
    %51 = arith.mulf %48, %50 : vector<16x128xf32>
    %52 = arith.subf %25, %19 : vector<16x128xf32>
    %53 = arith.subf %28, %22 : vector<16x128xf32>
    %54 = arith.mulf %52, %53 : vector<16x128xf32>
    %55 = arith.subf %37, %31 : vector<16x128xf32>
    %56 = arith.subf %40, %34 : vector<16x128xf32>
    %57 = arith.mulf %55, %56 : vector<16x128xf32>
    %58 = arith.addf %54, %57 : vector<16x128xf32>
    %59 = arith.subf %58, %51 : vector<16x128xf32>
    %cst_19 = arith.constant 9.99999997E-7 : f32
    %60 = vector.broadcast %cst_19 : f32 to vector<16x128xf32>
    %61 = arith.addf %59, %60 : vector<16x128xf32>
    %62 = tpu.reciprocal %61 {approx = true} : vector<16x128xf32> -> vector<16x128xf32>
    %63 = arith.mulf %51, %62 : vector<16x128xf32>
    %64 = arith.maximumf %25, %37 : vector<16x128xf32>
    %65 = arith.minimumf %19, %31 : vector<16x128xf32>
    %66 = arith.subf %64, %65 : vector<16x128xf32>
    %67 = arith.maximumf %28, %40 : vector<16x128xf32>
    %68 = arith.minimumf %22, %34 : vector<16x128xf32>
    %69 = arith.subf %67, %68 : vector<16x128xf32>
    %70 = arith.mulf %66, %69 : vector<16x128xf32>
    %cst_20 = arith.constant 9.99999997E-7 : f32
    %71 = vector.broadcast %cst_20 : f32 to vector<16x128xf32>
    %72 = arith.addf %70, %71 : vector<16x128xf32>
    %73 = tpu.reciprocal %72 {approx = true} : vector<16x128xf32> -> vector<16x128xf32>
    %74 = arith.mulf %61, %73 : vector<16x128xf32>
    %75 = arith.addf %63, %74 : vector<16x128xf32>
    %cst_21 = arith.constant 1.000000e+00 : f32
    %76 = vector.broadcast %cst_21 : f32 to vector<16x128xf32>
    %77 = arith.subf %75, %76 : vector<16x128xf32>
    %cst_22 = arith.constant 9.99999997E-7 : f32
    %78 = vector.broadcast %cst_22 : f32 to vector<16x128xf32>
    %79 = arith.maximumf %77, %78 : vector<16x128xf32>
    %80 = math.log %79 : vector<16x128xf32>
    %cst_23 = arith.constant 0.000000e+00 : f32
    %81 = vector.broadcast %cst_23 : f32 to vector<16x128xf32>
    %82 = arith.subf %81, %80 : vector<16x128xf32>
    %c128_i32_24 = arith.constant 128 : i32
    %83 = arith.muli %16, %c128_i32_24 : i32
    %84 = arith.subi %6, %83 : i32
    %85 = vector.broadcast %84 : i32 to vector<16x128xi32>
    %86 = arith.cmpi slt, %11, %85 : vector<16x128xi32>
    %cst_25 = arith.constant 0.000000e+00 : f32
    %87 = vector.broadcast %cst_25 : f32 to vector<16x128xf32>
    %88 = arith.select %86, %82, %87 : vector<16x128xi1>, vector<16x128xf32>
    %89 = vector.extract_strided_slice %88 {offsets = [0, 0], sizes = [8, 128], strides = [1, 1]} : vector<16x128xf32> to vector<8x128xf32>
    %90 = vector.extract_strided_slice %88 {offsets = [8, 0], sizes = [8, 128], strides = [1, 1]} : vector<16x128xf32> to vector<8x128xf32>
    %91 = arith.addf %89, %90 : vector<8x128xf32>
    %92 = arith.addf %14, %91 : vector<8x128xf32>
    %c1_i32_26 = arith.constant 1 : i32
    %93 = arith.addf %13, %92 : vector<8x128xf32>
    %c0_27 = arith.constant 0 : index
    %c0_28 = arith.constant 0 : index
    %c0_29 = arith.constant 0 : index
    %94 = vector.load %arg4[%c0_27, %c0_28, %c0_29] : memref<1x8x128xf32, #tpu.memory_space<vmem>>, vector<1x8x128xf32>
    %95 = vector.shape_cast %94 : vector<1x8x128xf32> to vector<8x128xf32>
    %96 = vector.shape_cast %93 : vector<8x128xf32> to vector<1x8x128xf32>
    tpu.vector_store %arg4[%c0_27, %c0_28, %c0_29], %96 {strides = array<i32>} : memref<1x8x128xf32, #tpu.memory_space<vmem>>, vector<1x8x128xf32>,
    return
  }
  func.func @transform_0(%arg0: i32, %arg1: i32) -> (i32, i32, i32) {
    %c1_i32 = arith.constant 1 : i32
    %0 = arith.muli %arg0, %c1_i32 : i32
    %1 = arith.addi %0, %arg1 : i32
    %c0_i32 = arith.constant 0 : i32
    %c0_i32_0 = arith.constant 0 : i32
    %c0_i32_1 = arith.constant 0 : i32
    return %c0_i32, %1, %c0_i32_0 : i32, i32, i32
  }
  func.func @transform_1(%arg0: i32, %arg1: i32) -> (i32, i32, i32) {
    %c1_i32 = arith.constant 1 : i32
    %0 = arith.muli %arg0, %c1_i32 : i32
    %1 = arith.addi %0, %arg1 : i32
    %c0_i32 = arith.constant 0 : i32
    %c0_i32_0 = arith.constant 0 : i32
    %c0_i32_1 = arith.constant 0 : i32
    return %c0_i32, %1, %c0_i32_0 : i32, i32, i32
  }
  func.func @transform_2(%arg0: i32, %arg1: i32) -> (i32, i32, i32) {
    %c0_i32 = arith.constant 0 : i32
    %c0_i32_0 = arith.constant 0 : i32
    %c0_i32_1 = arith.constant 0 : i32
    return %arg0, %c0_i32, %c0_i32_0 : i32, i32, i32
  }
}

</mosaic_0001>

<bundles_post_ra>
// kernel: tpu_custom_call.1
= control target key start
LH: loop header
LB: loop body
LE: loop exit
PB: predicated region body
PF: predicated region fallthrough
CT: control target
= control target key end

     0   :  { %7 = vsyncpa [#allocation3], 0  ;;  %s315_s0 = inlined_call_operand.hbm [shape: f32[4,16,128], index: 0, kind: input, shape index: {}]   ;;  %s316_s1 = inlined_call_operand.hbm [shape: f32[4,16,128], index: 1, kind: input, shape index: {}]   ;;  %s317_s2 = inlined_call_operand.hbm [shape: f32[1,8,128], index: 2, kind: output, shape index: {}]  }
   0x1   :  { %8 = vsyncpa [#allocation6], 0 }
   0x2   :  { %9 = vsyncpa [#allocation4], 0  ;;  %s286_s9 = smov [#allocation2]  }
   0x3   :  { %s19_s10 = sshll.u32 %s286_s9, 4  ;;  %s20_s10 = int_to_ptr.vmem [resolvable:$true] %s19_s10 }
   0x4   :  { %s228_s11 = scalar_lea.vmem %s20_s10, 1024  ;;  %p233_p1 = scmp.lt.s32.totalorder %s20_s10, %s20_s10 }
   0x5   :  { %p229_p0 = scmp.ne.s32.totalorder %s20_s10, %s228_s11  ;;  %p234_p2 = scmp.lt.s32.totalorder %s228_s11, %s228_s11 }
   0x7   :  { %p235_p3 = por %p234_p2, %p233_p1 }
   0x9   :  { %p236_p4 = pnand %p235_p3, %p229_p0 }
   0xb   :  { %239 = shalt.err (!%p236_p4)
}
   0xc   :  { %s287_s12 = smov 128   ;;  %s288_s13 = smov 8  }
   0xd   :  { %25 = dma.hbm_to_vmem [thread:$0]  %s315_s0, 1024, %s20_s10, [#allocation3], %s287_s12, %s287_s12, %s288_s13  }
   0xe   :  { %s289_s16 = smov [#allocation5]  }
   0xf   :  { %s35_s17 = sshll.u32 %s289_s16, 4  ;;  %s36_s17 = int_to_ptr.vmem [resolvable:$true] %s35_s17 }
  0x10   :  { %s248_s18 = scalar_lea.vmem %s36_s17, 1024  ;;  %p253_p6 = scmp.lt.s32.totalorder %s36_s17, %s36_s17 }
  0x11   :  { %p249_p5 = scmp.ne.s32.totalorder %s36_s17, %s248_s18  ;;  %p254_p7 = scmp.lt.s32.totalorder %s248_s18, %s248_s18 }
  0x13   :  { %p255_p8 = por %p254_p7, %p253_p6 }
  0x15   :  { %p256_p9 = pnand %p255_p8, %p249_p5 }
  0x17   :  { %259 = shalt.err (!%p256_p9)
}
  0x18   :  { %41 = dma.hbm_to_vmem [thread:$0]  %s316_s1, 1024, %s36_s17, [#allocation6], %s287_s12, %s287_s12, %s288_s13  }
  0x19   :  { %280 = dma.done.wait [#allocation3], 1024  }
  0x1a   :  { %281 = vsyncadd [#allocation3], 4294966272 }
  0x1b   :  { %282 = dma.done.wait [#allocation6], 1024  }
  0x1c   :  { %283 = vsyncadd [#allocation6], 4294966272  ;;  %v70_v0 = vld [vmem:[#allocation2] sm:$0xff]  ;;  %v71_v1 = vld [vmem:[#allocation2 + $0x8] sm:$0xff]  ;;  %s290_s0 = smov [#allocation7]  }
  0x1d   :  { %v74_v2 = vld [vmem:[#allocation2 + $0x10] sm:$0xff]  ;;  %v75_v3 = vld [vmem:[#allocation2 + $0x18] sm:$0xff]  ;;  %v78_v4 = vld [vmem:[#allocation2 + $0x20] sm:$0xff]  ;;  %s184_s1 = sshll.u32 %s290_s0, 4  ;;  %s185_s1 = int_to_ptr.vmem [resolvable:$true] %s184_s1 }
  0x1e   :  { %v79_v5 = vld [vmem:[#allocation2 + $0x28] sm:$0xff]  ;;  %v82_v6 = vld [vmem:[#allocation2 + $0x30] sm:$0xff]  ;;  %v83_v7 = vld [vmem:[#allocation2 + $0x38] sm:$0xff]  ;;  %v113_v9 = vsub.f32 %v78_v4, %v70_v0  ;;  %s260_s21 = scalar_lea.vmem %s185_s1, 128  ;;  %p265_p11 = scmp.lt.s32.totalorder %s185_s1, %s185_s1 }
  0x1f   :  { %v84_v8 = vld [vmem:[#allocation5] sm:$0xff]  ;;  %v114_v10 = vsub.f32 %v79_v5, %v71_v1  ;;  %v85_v11 = vld [vmem:[#allocation5 + $0x8] sm:$0xff]  ;;  %v87_v12 = vld [vmem:[#allocation5 + $0x10] sm:$0xff]  ;;  %v115_v15 = vsub.f32 %v82_v6, %v74_v2  ;;  %v116_v16 = vsub.f32 %v83_v7, %v75_v3  ;;  %p261_p10 = scmp.ne.s32.totalorder %s185_s1, %s260_s21  ;;  %p266_p12 = scmp.lt.s32.totalorder %s260_s21, %s260_s21 }
  0x20   :  { %v88_v13 = vld [vmem:[#allocation5 + $0x18] sm:$0xff]  ;;  %v97_v14 = vmax.f32 %v70_v0, %v84_v8  ;;  %v137_v17 = vmin.f32 %v70_v0, %v84_v8  ;;  %v90_v18 = vld [vmem:[#allocation5 + $0x20] sm:$0xff]  ;;  %v91_v19 = vld [vmem:[#allocation5 + $0x28] sm:$0xff]  ;;  %v98_v21 = vmax.f32 %v71_v1, %v85_v11  ;;  %v103_v22 = vmax.f32 %v74_v2, %v87_v12 }
  0x21   :  { %v93_v20 = vld [vmem:[#allocation5 + $0x30] sm:$0xff]  ;;  %v104_v23 = vmax.f32 %v75_v3, %v88_v13  ;;  %v138_v24 = vmin.f32 %v71_v1, %v85_v11  ;;  %v94_v25 = vld [vmem:[#allocation5 + $0x38] sm:$0xff]  ;;  %v95_v26 = vmin.f32 %v78_v4, %v90_v18  ;;  %v96_v27 = vmin.f32 %v79_v5, %v91_v19  ;;  %p267_p13 = por %p266_p12, %p265_p11 }
  0x22   :  { %v101_v28 = vmin.f32 %v82_v6, %v93_v20  ;;  %v117_v29 = vmul.f32 %v115_v15, %v113_v9  ;;  %v102_v30 = vmin.f32 %v83_v7, %v94_v25  ;;  %v118_v31 = vmul.f32 %v116_v16, %v114_v10 }
  0x23   :  { %v119_v32 = vsub.f32 %v90_v18, %v84_v8  ;;  %v120_v33 = vsub.f32 %v91_v19, %v85_v11  ;;  %v99_v34 = vsub.f32 %v95_v26, %v97_v14  ;;  %v100_v35 = vsub.f32 %v96_v27, %v98_v21  ;;  %p268_p0 = pnand %p267_p13, %p261_p10 }
  0x24   :  { %v105_v36 = vsub.f32 %v101_v28, %v103_v22  ;;  %v121_v37 = vsub.f32 %v93_v20, %v87_v12  ;;  %v106_v38 = vsub.f32 %v102_v30, %v104_v23  ;;  %v122_v39 = vsub.f32 %v94_v25, %v88_v13 }
  0x25   :  { %v135_v40 = vmax.f32 %v78_v4, %v90_v18  ;;  %v136_v41 = vmax.f32 %v79_v5, %v91_v19  ;;  %v107_v42 = vmax.f32 %v99_v34, 0.0  ;;  %v108_v43 = vmax.f32 %v100_v35, 0.0 }
  0x26   :  { %v109_v44 = vmax.f32 %v105_v36, 0.0  ;;  %v123_v45 = vmul.f32 %v121_v37, %v119_v32  ;;  %v110_v46 = vmax.f32 %v106_v38, 0.0  ;;  %v124_v47 = vmul.f32 %v122_v39, %v120_v33 }
  0x27   :  { %v139_v48 = vsub.f32 %v135_v40, %v137_v17  ;;  %v140_v49 = vsub.f32 %v136_v41, %v138_v24  ;;  %v141_v52 = vmax.f32 %v82_v6, %v93_v20  ;;  %v142_v53 = vmax.f32 %v83_v7, %v94_v25 }
  0x28   :  { %v111_v50 = vmul.f32 %v109_v44, %v107_v42  ;;  %v125_v51 = vadd.f32 %v123_v45, %v117_v29  ;;  %v112_v54 = vmul.f32 %v110_v46, %v108_v43  ;;  %v126_v55 = vadd.f32 %v124_v47, %v118_v31 }
  0x29   :  { %v143_v56 = vmin.f32 %v74_v2, %v87_v12  ;;  %v144_v57 = vmin.f32 %v75_v3, %v88_v13  ;;  %v60_v14 = vlaneseq }
  0x2a   :  { %v127_v58 = vsub.f32 %v125_v51, %v111_v50  ;;  %v128_v59 = vsub.f32 %v126_v55, %v112_v54 }
  0x2b   :  { %v145_v60 = vsub.f32 %v141_v52, %v143_v56  ;;  %v146_v61 = vsub.f32 %v142_v53, %v144_v57  ;;  %v61_v19 = vshrl.u32 %v60_v14, 7  ;;  %v64_v21 = vand.u32 127, %v60_v14 }
  0x2c   :  { %v129_v62 = vadd.f32 1e-06, %v127_v58  ;;  %v130_v63 = vadd.f32 1e-06, %v128_v59 }
  0x2d   :  { %v147_v0 = vmul.f32 %v145_v60, %v139_v48  ;;  %v148_v1 = vmul.f32 %v146_v61, %v140_v49  ;;  %v62_v20 = vadd.s32 8, %v61_v19  ;;  %v65_v22 = vmul.u32 128, %v61_v19 }
  0x2e   :  { %208 = vrcp.f32 %v129_v62 }
  0x2f   :  { %210 = vrcp.f32 %v130_v63  ;;  %v149_v4 = vadd.f32 1e-06, %v147_v0  ;;  %v150_v5 = vadd.f32 1e-06, %v148_v1  ;;  %v66_v23 = vmul.u32 128, %v62_v20 }
  0x30   :  { %v67_v24 = vadd.s32 %v65_v22, %v64_v21 }
  0x31   :  { %212 = vrcp.f32 %v149_v4  ;;  %v68_v25 = vadd.s32 %v66_v23, %v64_v21 }
  0x32   :  { %214 = vrcp.f32 %v150_v5  ;;  %vm170_vm0 = vcmp.lt.s32.totalorder %v67_v24, 64 }
  0x33   :  { %vm171_vm1 = vcmp.lt.s32.totalorder %v68_v25, 64 }
  0x3b   :  { %v209_v6 = vpop.eup %208 }
  0x3c   :  { %v211_v7 = vpop.eup %210  ;;  %v133_v8 = vmul.f32 %v209_v6, %v111_v50 }
  0x3d   :  { %v134_v2 = vmul.f32 %v211_v7, %v112_v54 }
  0x3e   :  { %v213_v9 = vpop.eup %212 }
  0x3f   :  { %v215_v3 = vpop.eup %214  ;;  %v153_v10 = vmul.f32 %v213_v9, %v129_v62 }
  0x40   :  { %v154_v11 = vmul.f32 %v215_v3, %v130_v63 }
  0x41   :  { %v155_v12 = vadd.f32 %v153_v10, %v133_v8 }
  0x42   :  { %v156_v13 = vadd.f32 %v154_v11, %v134_v2 }
  0x43   :  { %v200_v15 = vadd.f32 -1.0, %v155_v12 }
  0x44   :  { %v201_v16 = vadd.f32 -1.0, %v156_v13 }
  0x45   :  { %v159_v17 = vmax.f32 %v200_v15, 1e-06 }
  0x46   :  { %v160_v18 = vmax.f32 %v201_v16, 1e-06 }
  0x47   :  { %216 = vlog2.f32 %v159_v17 }
  0x48   :  { %218 = vlog2.f32 %v160_v18 }
  0x54   :  { %v217_v26 = vpop.eup %216 }
  0x55   :  { %v219_v27 = vpop.eup %218  ;;  %v162_v28 = vmul.f32 0.6931472, %v217_v26 }
  0x56   :  { %v164_v29 = vmul.f32 0.6931472, %v219_v27 }
  0x57   :  { %v165_v30 = vsub.f32 0.0, %v162_v28 }
  0x58   :  { %v166_v31 = vsub.f32 0.0, %v164_v29 }
  0x59   :  { %v172_v32 = vsel %vm170_vm0, %v165_v30, 0.0 }
  0x5a   :  { %v173_v33 = vsel %vm171_vm1, %v166_v31, 0.0 }
  0x5b   :  { %v174_v34 = vadd.f32 %v173_v33, %v172_v32 }
  0x5d   :  { %177 = vst [vmem:[#allocation7] sm:$0xff] %v174_v34 }
  0x5e   :  { %271 = shalt.err (!%p268_p0)
}
  0x5f   :  { %187 = dma.vmem_to_hbm [thread:$0]  %s185_s1, 128, %s317_s2, [#allocation4]  }
  0x60   :  { %284 = dma.done.wait [#allocation4], 128  }
  0x61   :  { %285 = vsyncadd [#allocation4], 4294967168 }
  0x62   :  { %191 = vsyncpa [#allocation3], 1 }
  0x63   :  { %192 = vsyncpa [#allocation6], 1 }
  0x64   :  { %193 = vsyncpa [#allocation4], 1 }

</bundles_post_ra>
